<compile_context>
chip_gen: v6e
topology: v6e:2x2x1
jax: 0.10.0
libtpu: 0.0.40
codegen_flags: <defaults>
</compile_context>

<pallas_src>
import functools

import jax
import jax.numpy as jnp
from jax.experimental import pallas as pl
from jax.experimental.pallas import tpu as pltpu

_NEG_BIG = -1e30


def _supcon_kernel(*refs, ta, tc, nc_valid, loss_scale, use_labels):
    """Grid = (anchor tiles ["parallel"], contrast tiles ["arbitrary"])."""
    if use_labels:
        (at_ref, c_ref, alab_ref, clab_ref, cnt_ref, out_ref,
         m_sc, l_sc, sp_sc) = refs
    else:
        (at_ref, c_ref, maskt_ref, cnt_ref, out_ref,
         m_sc, l_sc, sp_sc) = refs

    i = pl.program_id(0)            # anchor-tile index   ("parallel")
    k = pl.program_id(1)            # contrast-tile index ("arbitrary")

    @pl.when(k == 0)
    def _init():
        m_sc[...] = jnp.full_like(m_sc, _NEG_BIG)
        l_sc[...] = jnp.zeros_like(l_sc)
        sp_sc[...] = jnp.zeros_like(sp_sc)

    # [TC, TA] similarity tile: [TC, dim] @ [dim, TA] (canonical MXU feed, no
    # per-step transpose of the resident anchor tile). 1/temperature is already
    # folded into the anchor features, accumulation is f32.
    s = jnp.dot(c_ref[...], at_ref[...], preferred_element_type=jnp.float32)

    def _flash_update(s_lse, pos_weighted):
        # Positive-pair accumulator (unshifted logits; see precision note).
        sp_sc[...] += jnp.sum(pos_weighted, axis=0, keepdims=True)
        # Online log-sum-exp over the (implicitly) masked logits.
        tile_max = jnp.max(s_lse, axis=0, keepdims=True)
        m_new = jnp.maximum(m_sc[...], tile_max)
        l_sc[...] = (jnp.exp(m_sc[...] - m_new) * l_sc[...]
                     + jnp.sum(jnp.exp(s_lse - m_new), axis=0, keepdims=True))
        m_sc[...] = m_new

    # The logits-mask (self-pairs + padded contrast rows) is only needed on
    # tiles that touch the self-diagonal or the padded tail.
    a_lo = i * ta
    c_lo = k * tc
    diag_overlap = jnp.logical_and(a_lo < c_lo + tc, c_lo < a_lo + ta)
    needs_mask = jnp.logical_or(diag_overlap, (c_lo + tc) > nc_valid)

    @pl.when(needs_mask)
    def _edge_tile():
        a_idx = a_lo + jax.lax.broadcasted_iota(jnp.int32, (tc, ta), 1)
        c_idx = c_lo + jax.lax.broadcasted_iota(jnp.int32, (tc, ta), 0)
        lmask = jnp.logical_and(a_idx != c_idx, c_idx < nc_valid)
        # Single select reused by both the tile max and the exp; exp of
        # (-1e30 - m_new) underflows to exactly 0 (m_new is always finite).
        s_m = jnp.where(lmask, s, _NEG_BIG)
        if use_labels:
            pos = jnp.logical_and(alab_ref[...] == clab_ref[...], lmask)
            pw = jnp.where(pos, s, 0.0)
        else:
            pw = maskt_ref[...] * jnp.where(lmask, s, 0.0)
        _flash_update(s_m, pw)

    @pl.when(jnp.logical_not(needs_mask))
    def _interior_tile():
        if use_labels:
            pw = jnp.where(alab_ref[...] == clab_ref[...], s, 0.0)
        else:
            pw = maskt_ref[...] * s
        _flash_update(s, pw)

    @pl.when(k == pl.num_programs(1) - 1)
    def _finalize():
        lse = m_sc[...] + jnp.log(l_sc[...])
        cnt = cnt_ref[...]                      # wrapper-precomputed positives
        mean_pos = sp_sc[...] / jnp.where(cnt > 0.0, cnt, 1.0)
        # Anchors with no positives (padded anchors / singleton classes) emit 0
        # (the PyTorch original NaNs); padded anchors are sliced off outside.
        out_ref[...] = jnp.where(cnt > 0.0, -loss_scale * (mean_pos - lse), 0.0)


def _round_up(x, m):
    return (x + m - 1) // m * m


def _cdiv(a, b):
    return (a + b - 1) // b


def _vmem_capacity_bytes():
    try:
        return int(pltpu.get_tpu_info().vmem_capacity_bytes)
    except Exception:
        return 64 * 1024 * 1024       # conservative (v7x-sized) fallback


def supcon_loss(features, labels=None, mask=None, *,
                temperature=0.07, contrast_mode="all", base_temperature=0.07,
                block_a=None, block_c=None):
    """JAX/Pallas equivalent of SupConLoss.forward. Returns a scalar float32."""
    features = jnp.asarray(features)
    if features.ndim < 3:
        raise ValueError("`features` needs to be [bsz, n_views, ...], "
                         "at least 3 dimensions are required")
    if features.ndim > 3:
        features = features.reshape(features.shape[0], features.shape[1], -1)
    bsz, n_views, dim = features.shape

    if labels is not None and mask is not None:
        raise ValueError("Cannot define both `labels` and `mask`")
    use_labels = mask is None
    if use_labels:
        if labels is None:
            base_labels = jnp.arange(bsz, dtype=jnp.int32)   # SimCLR: eye mask
        else:
            base_labels = jnp.asarray(labels).reshape(-1).astype(jnp.int32)
            if base_labels.shape[0] != bsz:
                raise ValueError("Num of labels does not match num of features")
    else:
        base_mask = jnp.asarray(mask).astype(jnp.float32)

    # torch.cat(torch.unbind(features, 1), 0): view-major stacking.
    contrast_feature = jnp.transpose(features, (1, 0, 2)).reshape(
        n_views * bsz, dim)
    contrast_count = n_views
    if contrast_mode == "one":
        anchor_feature = features[:, 0, :]
        anchor_count = 1
    elif contrast_mode == "all":
        anchor_feature = contrast_feature
        anchor_count = contrast_count
    else:
        raise ValueError(f"Unknown mode: {contrast_mode}")

    na = anchor_count * bsz
    nc = contrast_count * bsz
    inv_t = 1.0 / float(temperature)
    feat_dtype = features.dtype
    itemsize = jnp.dtype(feat_dtype).itemsize

    # ---- tile sizes & VMEM budget (generation-aware) -----------------------
    vmem_cap = _vmem_capacity_bytes()
    small_vmem = vmem_cap <= 96 * 1024 * 1024          # v7x-class (64 MiB/TC)
    vmem_limit = int(min(vmem_cap * 3 // 4, 96 * 1024 * 1024))

    # Anchors ride the lane axis of the [TC, TA] tile and the [1, TA] output,
    # so TA is always a multiple of 128 (full lane occupancy, unmasked stores).
    ta = 512 if block_a is None else int(block_a)
    ta = max(128, _round_up(ta, 128))
    ta = min(ta, _round_up(na, 128))
    # Contrast samples ride the sublane axis (multiple of 8 suffices).
    tc = (1024 if small_vmem else 2048) if block_c is None else int(block_c)
    tc = max(8, _round_up(tc, 8))
    tc = min(tc, _round_up(nc, 8))

    if small_vmem:
        # v7x: cap tile area so ~6 live [TC,TA] f32 temps + double-buffered
        # feature tiles fit in 64 MiB with headroom.
        while ta * tc > 512 * 1024 and tc > 512:
            tc = max(8, _round_up(tc // 2, 8))
        # Megacore balance: the "parallel" anchor axis shards across the 2 TCs;
        # keep at least 2 anchor tiles whenever the problem allows it.
        if block_a is None:
            while _cdiv(na, ta) < 2 and ta > 128:
                ta = max(128, _round_up(ta // 2, 128))

    def _est_vmem(ta_, tc_):
        return (2 * tc_ * dim * itemsize                  # contrast (dbl-buf)
                + 2 * dim * ta_ * itemsize                # anchors  (dbl-buf)
                + (2 * tc_ * ta_ * 4 if not use_labels else 0)   # mask tiles
                + 6 * tc_ * ta_ * 4                       # [TC,TA] temporaries
                + 16 * ta_ * 4)                           # scratch / labels

    while _est_vmem(ta, tc) > vmem_limit and tc > 128:
        tc = max(128, _round_up(tc // 2, 8))
    while _est_vmem(ta, tc) > vmem_limit and ta > 128:
        ta = max(128, _round_up(ta // 2, 128))

    na_p = _round_up(na, ta)
    nc_p = _round_up(nc, tc)
    ga, gk = na_p // ta, nc_p // tc

    # ---- inputs -------------------------------------------------------------
    # 1/temperature folded into the anchors (O(na*dim) wrapper work) and the
    # anchors stored pre-transposed as [dim, na_p] so the MXU RHS is [K, N].
    anchor_scaled = (anchor_feature.astype(jnp.float32) * inv_t).astype(feat_dtype)
    anchor_t = jnp.pad(anchor_scaled.T, ((0, 0), (0, na_p - na)))
    contrast_p = jnp.pad(contrast_feature, ((0, nc_p - nc), (0, 0)))

    # Per-anchor positive mass (mask.sum(1) of the PyTorch code), precomputed
    # here so the kernel drops one accumulator + one reduction per grid step.
    if use_labels:
        same = base_labels[:, None] == base_labels[None, :]
        pos_base = same.sum(axis=1).astype(jnp.float32) * contrast_count - 1.0
    else:
        pos_base = (base_mask.sum(axis=1) * contrast_count
                    - jnp.diagonal(base_mask)).astype(jnp.float32)
    cnt = jnp.pad(jnp.tile(pos_base, anchor_count), (0, na_p - na))
    cnt = cnt.reshape(1, na_p)

    in_arrays = [anchor_t, contrast_p]
    in_specs = [pl.BlockSpec((dim, ta), lambda i, k: (0, i)),
                pl.BlockSpec((tc, dim), lambda i, k: (k, 0))]
    if use_labels:
        # O(N) label vectors instead of an N^2 mask in HBM.
        a_lab = jnp.pad(jnp.tile(base_labels, anchor_count), (0, na_p - na))
        c_lab = jnp.pad(jnp.tile(base_labels, contrast_count), (0, nc_p - nc))
        in_arrays += [a_lab.reshape(1, na_p), c_lab.reshape(nc_p, 1)]
        in_specs += [pl.BlockSpec((1, ta), lambda i, k: (0, i)),
                     pl.BlockSpec((tc, 1), lambda i, k: (k, 0))]
    else:
        # TODO(synk): the explicit `mask=` fallback still streams the tiled N^2
        # mask as f32 to preserve arbitrary float-mask semantics; pack to
        # bf16/int8 (or bit-pack) if this path ever matters for bandwidth.
        mask_t = jnp.tile(base_mask.T, (contrast_count, anchor_count))
        mask_t = jnp.pad(mask_t, ((0, nc_p - nc), (0, na_p - na)))
        in_arrays += [mask_t.astype(jnp.float32)]
        in_specs += [pl.BlockSpec((tc, ta), lambda i, k: (k, i))]
    in_arrays += [cnt]
    in_specs += [pl.BlockSpec((1, ta), lambda i, k: (0, i))]

    kern = functools.partial(
        _supcon_kernel, ta=ta, tc=tc, nc_valid=nc,
        loss_scale=float(temperature / base_temperature),
        use_labels=use_labels)

    bytes_accessed = int(na_p * dim * itemsize
                         + ga * nc_p * dim * itemsize
                         + (nc_p * na_p * 4 if not use_labels
                            else 4 * (na_p + nc_p))
                         + 3 * 4 * na_p)

    out = pl.pallas_call(
        kern,
        out_shape=jax.ShapeDtypeStruct((1, na_p), jnp.float32),
        grid_spec=pltpu.PrefetchScalarGridSpec(
            num_scalar_prefetch=0,
            grid=(ga, gk),
            in_specs=in_specs,
            out_specs=pl.BlockSpec((1, ta), lambda i, k: (0, i)),
            scratch_shapes=[pltpu.VMEM((1, ta), jnp.float32)] * 3),
        compiler_params=pltpu.CompilerParams(
            dimension_semantics=("parallel", "arbitrary"),
            vmem_limit_bytes=vmem_limit),
        cost_estimate=pl.CostEstimate(
            flops=int(2 * na_p * nc_p * dim),
            transcendentals=int(na_p * nc_p),
            bytes_accessed=bytes_accessed),
    )(*in_arrays)

    # loss.view(anchor_count, batch_size).mean() == mean over all valid anchors.
    return jnp.mean(out[0, :na])


def _supcon_loss_ref(features, labels=None, mask=None, *,
                     temperature=0.07, contrast_mode="all",
                     base_temperature=0.07):
    """Pure-JAX reference mirroring the PyTorch module (for checking)."""
    features = jnp.asarray(features, dtype=jnp.float32)
    bsz, n_views, _ = features.shape
    if labels is None and mask is None:
        base_mask = jnp.eye(bsz, dtype=jnp.float32)
    elif labels is not None:
        labels = jnp.asarray(labels).reshape(-1)
        base_mask = (labels[:, None] == labels[None, :]).astype(jnp.float32)
    else:
        base_mask = jnp.asarray(mask).astype(jnp.float32)
    contrast = jnp.transpose(features, (1, 0, 2)).reshape(n_views * bsz, -1)
    if contrast_mode == "one":
        anchor, anchor_count = features[:, 0], 1
    else:
        anchor, anchor_count = contrast, n_views
    logits = anchor @ contrast.T / temperature
    logits = logits - jnp.max(logits, axis=1, keepdims=True)
    m = jnp.tile(base_mask, (anchor_count, n_views))
    lm = 1.0 - jnp.eye(m.shape[0], m.shape[1], dtype=jnp.float32)
    m = m * lm
    exp_logits = jnp.exp(logits) * lm
    log_prob = logits - jnp.log(exp_logits.sum(1, keepdims=True))
    mlpp = (m * log_prob).sum(1) / m.sum(1)
    return jnp.mean(-(temperature / base_temperature) * mlpp)


if __name__ == "__main__":
    key = jax.random.PRNGKey(0)
    k1, k2 = jax.random.split(key)

    # --- small case (single-tile grid) -------------------------------------
    bsz, n_views, dim = 4, 2, 32
    feats = jax.random.normal(k1, (bsz, n_views, dim), dtype=jnp.float32)
    feats = feats / jnp.linalg.norm(feats, axis=-1, keepdims=True)
    labels = jnp.array([0, 1, 0, 1], dtype=jnp.int32)

    checks = []
    # supervised (labels)
    checks.append((supcon_loss(feats, labels=labels),
                   _supcon_loss_ref(feats, labels=labels)))
    # SimCLR (no labels / no mask)
    checks.append((supcon_loss(feats), _supcon_loss_ref(feats)))
    # explicit mask argument
    mask_arr = (labels[:, None] == labels[None, :]).astype(jnp.float32)
    checks.append((supcon_loss(feats, mask=mask_arr),
                   _supcon_loss_ref(feats, mask=mask_arr)))
    # contrast_mode='one'
    checks.append((supcon_loss(feats, labels=labels, contrast_mode="one"),
                   _supcon_loss_ref(feats, labels=labels, contrast_mode="one")))

    # --- larger case exercising fast/slow tile paths + padding -------------
    bsz2, n_views2, dim2 = 160, 2, 64
    feats2 = jax.random.normal(k2, (bsz2, n_views2, dim2), dtype=jnp.float32)
    feats2 = feats2 / jnp.linalg.norm(feats2, axis=-1, keepdims=True)
    labels2 = (jnp.arange(bsz2) % 10).astype(jnp.int32)
    ref2 = _supcon_loss_ref(feats2, labels=labels2)
    # small explicit tiles: interior fast-path + diagonal + padded edge tiles
    checks.append((supcon_loss(feats2, labels=labels2,
                               block_a=128, block_c=128), ref2))
    # auto tile sizes
    checks.append((supcon_loss(feats2, labels=labels2), ref2))

    for got, want in checks:
        got = jax.block_until_ready(got)
        assert jnp.allclose(got, want, rtol=2e-4, atol=2e-4), (got, want)

    # bf16 feature path (halved feature DMA + full-rate MXU on v6e/v7x):
    # loose tolerance against the f32 reference.
    loss_bf16 = jax.block_until_ready(
        supcon_loss(feats2.astype(jnp.bfloat16), labels=labels2))
    assert jnp.isfinite(loss_bf16)
    assert abs(float(loss_bf16) - float(ref2)) < 0.05 * abs(float(ref2)) + 0.05

    print("KERNEL_OK")
</pallas_src>

<mosaic_0001>
module attributes {stable_mosaic.version = 11 : i64} {
  func.func @_supcon_kernel(%arg0: i32, %arg1: i32, %arg2: memref<32x128xf32, #tpu.memory_space<vmem>>, %arg3: memref<8x32xf32, #tpu.memory_space<vmem>>, %arg4: memref<1x128xi32, #tpu.memory_space<vmem>>, %arg5: memref<8x1xi32, #tpu.memory_space<vmem>>, %arg6: memref<1x128xf32, #tpu.memory_space<vmem>>, %arg7: memref<1x128xf32, #tpu.memory_space<vmem>>, %arg8: memref<1x128xf32, #tpu.memory_space<vmem>>, %arg9: memref<1x128xf32, #tpu.memory_space<vmem>>, %arg10: memref<1x128xf32, #tpu.memory_space<vmem>>) attributes {dimension_semantics = [#tpu.dimension_semantics<parallel>, #tpu.dimension_semantics<arbitrary>], iteration_bounds = array<i64: 1, 1>, scalar_prefetch = 0 : i64, scratch_operands = 3 : i64, tpu.core_type = #tpu.core_type<tc>, window_params = [{transform_indices = @transform_0, window_bounds = array<i64: 32, 128>}, {transform_indices = @transform_1, window_bounds = array<i64: 8, 32>}, {transform_indices = @transform_2, window_bounds = array<i64: 1, 128>}, {transform_indices = @transform_3, window_bounds = array<i64: 8, 1>}, {transform_indices = @transform_4, window_bounds = array<i64: 1, 128>}, {transform_indices = @transform_5, window_bounds = array<i64: 1, 128>}]} {
    %c0_i32 = arith.constant 0 : i32
    %0 = arith.cmpi eq, %arg1, %c0_i32 : i32
    %1 = arith.extui %0 : i1 to i32
    %c0_i32_0 = arith.constant 0 : i32
    %2 = arith.cmpi ne, %1, %c0_i32_0 : i32
    scf.if %2 {
      %cst_12 = arith.constant -1.000000e+30 : f32
      %24 = vector.broadcast %cst_12 : f32 to vector<1x128xf32>
      %c0_13 = arith.constant 0 : index
      %c0_14 = arith.constant 0 : index
      %25 = vector.load %arg8[%c0_13, %c0_14] : memref<1x128xf32, #tpu.memory_space<vmem>>, vector<1x128xf32>
      tpu.vector_store %arg8[%c0_13, %c0_14], %24 {strides = array<i32>} : memref<1x128xf32, #tpu.memory_space<vmem>>, vector<1x128xf32>,
      %cst_15 = arith.constant 0.000000e+00 : f32
      %26 = vector.broadcast %cst_15 : f32 to vector<1x128xf32>
      %c0_16 = arith.constant 0 : index
      %c0_17 = arith.constant 0 : index
      %27 = vector.load %arg9[%c0_16, %c0_17] : memref<1x128xf32, #tpu.memory_space<vmem>>, vector<1x128xf32>
      tpu.vector_store %arg9[%c0_16, %c0_17], %26 {strides = array<i32>} : memref<1x128xf32, #tpu.memory_space<vmem>>, vector<1x128xf32>,
      %cst_18 = arith.constant 0.000000e+00 : f32
      %28 = vector.broadcast %cst_18 : f32 to vector<1x128xf32>
      %c0_19 = arith.constant 0 : index
      %c0_20 = arith.constant 0 : index
      %29 = vector.load %arg10[%c0_19, %c0_20] : memref<1x128xf32, #tpu.memory_space<vmem>>, vector<1x128xf32>
      tpu.vector_store %arg10[%c0_19, %c0_20], %28 {strides = array<i32>} : memref<1x128xf32, #tpu.memory_space<vmem>>, vector<1x128xf32>,
    } else {
    }
    %c0 = arith.constant 0 : index
    %c0_1 = arith.constant 0 : index
    %3 = vector.load %arg3[%c0, %c0_1] : memref<8x32xf32, #tpu.memory_space<vmem>>, vector<8x32xf32>
    %c0_2 = arith.constant 0 : index
    %c0_3 = arith.constant 0 : index
    %4 = vector.load %arg2[%c0_2, %c0_3] : memref<32x128xf32, #tpu.memory_space<vmem>>, vector<32x128xf32>
    %cst = arith.constant dense<0.000000e+00> : vector<8x128xf32>
    %5 = tpu.matmul %3, %4, %cst {dimension_numbers = #tpu.dot_dimension_numbers<[1], [0], [0], [1], [0, 0, 1, 1], [], []>} : vector<8x32xf32>, vector<32x128xf32>, vector<8x128xf32> -> vector<8x128xf32>
    %c128_i32 = arith.constant 128 : i32
    %6 = arith.muli %arg0, %c128_i32 : i32
    %c8_i32 = arith.constant 8 : i32
    %7 = arith.muli %arg1, %c8_i32 : i32
    %c8_i32_4 = arith.constant 8 : i32
    %8 = arith.addi %7, %c8_i32_4 : i32
    %9 = arith.cmpi slt, %6, %8 : i32
    %c128_i32_5 = arith.constant 128 : i32
    %10 = arith.addi %6, %c128_i32_5 : i32
    %11 = arith.cmpi slt, %7, %10 : i32
    %12 = arith.andi %9, %11 : i1
    %c8_i32_6 = arith.constant 8 : i32
    %13 = arith.addi %7, %c8_i32_6 : i32
    %c8_i32_7 = arith.constant 8 : i32
    %14 = arith.cmpi sgt, %13, %c8_i32_7 : i32
    %15 = arith.ori %12, %14 : i1
    %16 = arith.extui %15 : i1 to i32
    %c0_i32_8 = arith.constant 0 : i32
    %17 = arith.cmpi ne, %16, %c0_i32_8 : i32
    scf.if %17 {
      %24 = tpu.iota {dimensions = array<i32: 1>} : vector<8x128xi32>
      %25 = vector.broadcast %6 : i32 to vector<8x128xi32>
      %26 = arith.addi %25, %24 : vector<8x128xi32>
      %27 = tpu.iota {dimensions = array<i32: 0>} : vector<8x128xi32>
      %28 = vector.broadcast %7 : i32 to vector<8x128xi32>
      %29 = arith.addi %28, %27 : vector<8x128xi32>
      %30 = arith.cmpi ne, %26, %29 : vector<8x128xi32>
      %c8_i32_12 = arith.constant 8 : i32
      %31 = vector.broadcast %c8_i32_12 : i32 to vector<8x128xi32>
      %32 = arith.cmpi slt, %29, %31 : vector<8x128xi32>
      %33 = arith.andi %30, %32 : vector<8x128xi1>
      %cst_13 = arith.constant -1.000000e+30 : f32
      %34 = vector.broadcast %cst_13 : f32 to vector<8x128xf32>
      %35 = arith.select %33, %5, %34 : vector<8x128xi1>, vector<8x128xf32>
      %c0_14 = arith.constant 0 : index
      %c0_15 = arith.constant 0 : index
      %36 = vector.load %arg4[%c0_14, %c0_15] : memref<1x128xi32, #tpu.memory_space<vmem>>, vector<1x128xi32>
      %c0_16 = arith.constant 0 : index
      %c0_17 = arith.constant 0 : index
      %37 = vector.load %arg5[%c0_16, %c0_17] : memref<8x1xi32, #tpu.memory_space<vmem>>, vector<8x1xi32>
      %38 = vector.broadcast %36 : vector<1x128xi32> to vector<8x128xi32>
      %39 = vector.broadcast %37 : vector<8x1xi32> to vector<8x128xi32>
      %40 = arith.cmpi eq, %38, %39 : vector<8x128xi32>
      %41 = arith.andi %40, %33 : vector<8x128xi1>
      %cst_18 = arith.constant 0.000000e+00 : f32
      %42 = vector.broadcast %cst_18 : f32 to vector<8x128xf32>
      %43 = arith.select %41, %5, %42 : vector<8x128xi1>, vector<8x128xf32>
      %c0_19 = arith.constant 0 : index
      %c0_20 = arith.constant 0 : index
      %44 = vector.load %arg10[%c0_19, %c0_20] : memref<1x128xf32, #tpu.memory_space<vmem>>, vector<1x128xf32>
      %cst_21 = arith.constant dense<0.000000e+00> : vector<128xf32>
      %45 = vector.multi_reduction <add>, %43, %cst_21 [0] : vector<8x128xf32> to vector<128xf32>
      %46 = vector.shape_cast %45 : vector<128xf32> to vector<1x128xf32>
      %47 = arith.addf %44, %46 : vector<1x128xf32>
      %c0_22 = arith.constant 0 : index
      %c0_23 = arith.constant 0 : index
      %48 = vector.load %arg10[%c0_22, %c0_23] : memref<1x128xf32, #tpu.memory_space<vmem>>, vector<1x128xf32>
      tpu.vector_store %arg10[%c0_22, %c0_23], %47 {strides = array<i32>} : memref<1x128xf32, #tpu.memory_space<vmem>>, vector<1x128xf32>,
      %cst_24 = arith.constant dense<0xFF800000> : vector<128xf32>
      %49 = vector.multi_reduction <maximumf>, %35, %cst_24 [0] : vector<8x128xf32> to vector<128xf32>
      %50 = vector.shape_cast %49 : vector<128xf32> to vector<1x128xf32>
      %c0_25 = arith.constant 0 : index
      %c0_26 = arith.constant 0 : index
      %51 = vector.load %arg8[%c0_25, %c0_26] : memref<1x128xf32, #tpu.memory_space<vmem>>, vector<1x128xf32>
      %52 = arith.maximumf %51, %50 : vector<1x128xf32>
      %c0_27 = arith.constant 0 : index
      %c0_28 = arith.constant 0 : index
      %53 = vector.load %arg8[%c0_27, %c0_28] : memref<1x128xf32, #tpu.memory_space<vmem>>, vector<1x128xf32>
      %54 = arith.subf %53, %52 : vector<1x128xf32>
      %55 = math.exp %54 : vector<1x128xf32>
      %c0_29 = arith.constant 0 : index
      %c0_30 = arith.constant 0 : index
      %56 = vector.load %arg9[%c0_29, %c0_30] : memref<1x128xf32, #tpu.memory_space<vmem>>, vector<1x128xf32>
      %57 = arith.mulf %55, %56 : vector<1x128xf32>
      %58 = vector.broadcast %52 : vector<1x128xf32> to vector<8x128xf32>
      %59 = arith.subf %35, %58 : vector<8x128xf32>
      %60 = math.exp %59 : vector<8x128xf32>
      %cst_31 = arith.constant dense<0.000000e+00> : vector<128xf32>
      %61 = vector.multi_reduction <add>, %60, %cst_31 [0] : vector<8x128xf32> to vector<128xf32>
      %62 = vector.shape_cast %61 : vector<128xf32> to vector<1x128xf32>
      %63 = arith.addf %57, %62 : vector<1x128xf32>
      %c0_32 = arith.constant 0 : index
      %c0_33 = arith.constant 0 : index
      %64 = vector.load %arg9[%c0_32, %c0_33] : memref<1x128xf32, #tpu.memory_space<vmem>>, vector<1x128xf32>
      tpu.vector_store %arg9[%c0_32, %c0_33], %63 {strides = array<i32>} : memref<1x128xf32, #tpu.memory_space<vmem>>, vector<1x128xf32>,
      %c0_34 = arith.constant 0 : index
      %c0_35 = arith.constant 0 : index
      %65 = vector.load %arg8[%c0_34, %c0_35] : memref<1x128xf32, #tpu.memory_space<vmem>>, vector<1x128xf32>
      tpu.vector_store %arg8[%c0_34, %c0_35], %52 {strides = array<i32>} : memref<1x128xf32, #tpu.memory_space<vmem>>, vector<1x128xf32>,
    } else {
    }
    %true = arith.constant true
    %18 = arith.xori %15, %true : i1
    %19 = arith.extui %18 : i1 to i32
    %c0_i32_9 = arith.constant 0 : i32
    %20 = arith.cmpi ne, %19, %c0_i32_9 : i32
    scf.if %20 {
      %c0_12 = arith.constant 0 : index
      %c0_13 = arith.constant 0 : index
      %24 = vector.load %arg4[%c0_12, %c0_13] : memref<1x128xi32, #tpu.memory_space<vmem>>, vector<1x128xi32>
      %c0_14 = arith.constant 0 : index
      %c0_15 = arith.constant 0 : index
      %25 = vector.load %arg5[%c0_14, %c0_15] : memref<8x1xi32, #tpu.memory_space<vmem>>, vector<8x1xi32>
      %26 = vector.broadcast %24 : vector<1x128xi32> to vector<8x128xi32>
      %27 = vector.broadcast %25 : vector<8x1xi32> to vector<8x128xi32>
      %28 = arith.cmpi eq, %26, %27 : vector<8x128xi32>
      %cst_16 = arith.constant 0.000000e+00 : f32
      %29 = vector.broadcast %cst_16 : f32 to vector<8x128xf32>
      %30 = arith.select %28, %5, %29 : vector<8x128xi1>, vector<8x128xf32>
      %c0_17 = arith.constant 0 : index
      %c0_18 = arith.constant 0 : index
      %31 = vector.load %arg10[%c0_17, %c0_18] : memref<1x128xf32, #tpu.memory_space<vmem>>, vector<1x128xf32>
      %cst_19 = arith.constant dense<0.000000e+00> : vector<128xf32>
      %32 = vector.multi_reduction <add>, %30, %cst_19 [0] : vector<8x128xf32> to vector<128xf32>
      %33 = vector.shape_cast %32 : vector<128xf32> to vector<1x128xf32>
      %34 = arith.addf %31, %33 : vector<1x128xf32>
      %c0_20 = arith.constant 0 : index
      %c0_21 = arith.constant 0 : index
      %35 = vector.load %arg10[%c0_20, %c0_21] : memref<1x128xf32, #tpu.memory_space<vmem>>, vector<1x128xf32>
      tpu.vector_store %arg10[%c0_20, %c0_21], %34 {strides = array<i32>} : memref<1x128xf32, #tpu.memory_space<vmem>>, vector<1x128xf32>,
      %cst_22 = arith.constant dense<0xFF800000> : vector<128xf32>
      %36 = vector.multi_reduction <maximumf>, %5, %cst_22 [0] : vector<8x128xf32> to vector<128xf32>
      %37 = vector.shape_cast %36 : vector<128xf32> to vector<1x128xf32>
      %c0_23 = arith.constant 0 : index
      %c0_24 = arith.constant 0 : index
      %38 = vector.load %arg8[%c0_23, %c0_24] : memref<1x128xf32, #tpu.memory_space<vmem>>, vector<1x128xf32>
      %39 = arith.maximumf %38, %37 : vector<1x128xf32>
      %c0_25 = arith.constant 0 : index
      %c0_26 = arith.constant 0 : index
      %40 = vector.load %arg8[%c0_25, %c0_26] : memref<1x128xf32, #tpu.memory_space<vmem>>, vector<1x128xf32>
      %41 = arith.subf %40, %39 : vector<1x128xf32>
      %42 = math.exp %41 : vector<1x128xf32>
      %c0_27 = arith.constant 0 : index
      %c0_28 = arith.constant 0 : index
      %43 = vector.load %arg9[%c0_27, %c0_28] : memref<1x128xf32, #tpu.memory_space<vmem>>, vector<1x128xf32>
      %44 = arith.mulf %42, %43 : vector<1x128xf32>
      %45 = vector.broadcast %39 : vector<1x128xf32> to vector<8x128xf32>
      %46 = arith.subf %5, %45 : vector<8x128xf32>
      %47 = math.exp %46 : vector<8x128xf32>
      %cst_29 = arith.constant dense<0.000000e+00> : vector<128xf32>
      %48 = vector.multi_reduction <add>, %47, %cst_29 [0] : vector<8x128xf32> to vector<128xf32>
      %49 = vector.shape_cast %48 : vector<128xf32> to vector<1x128xf32>
      %50 = arith.addf %44, %49 : vector<1x128xf32>
      %c0_30 = arith.constant 0 : index
      %c0_31 = arith.constant 0 : index
      %51 = vector.load %arg9[%c0_30, %c0_31] : memref<1x128xf32, #tpu.memory_space<vmem>>, vector<1x128xf32>
      tpu.vector_store %arg9[%c0_30, %c0_31], %50 {strides = array<i32>} : memref<1x128xf32, #tpu.memory_space<vmem>>, vector<1x128xf32>,
      %c0_32 = arith.constant 0 : index
      %c0_33 = arith.constant 0 : index
      %52 = vector.load %arg8[%c0_32, %c0_33] : memref<1x128xf32, #tpu.memory_space<vmem>>, vector<1x128xf32>
      tpu.vector_store %arg8[%c0_32, %c0_33], %39 {strides = array<i32>} : memref<1x128xf32, #tpu.memory_space<vmem>>, vector<1x128xf32>,
    } else {
    }
    %c0_i32_10 = arith.constant 0 : i32
    %21 = arith.cmpi eq, %arg1, %c0_i32_10 : i32
    %22 = arith.extui %21 : i1 to i32
    %c0_i32_11 = arith.constant 0 : i32
    %23 = arith.cmpi ne, %22, %c0_i32_11 : i32
    scf.if %23 {
      %c0_12 = arith.constant 0 : index
      %c0_13 = arith.constant 0 : index
      %24 = vector.load %arg8[%c0_12, %c0_13] : memref<1x128xf32, #tpu.memory_space<vmem>>, vector<1x128xf32>
      %c0_14 = arith.constant 0 : index
      %c0_15 = arith.constant 0 : index
      %25 = vector.load %arg9[%c0_14, %c0_15] : memref<1x128xf32, #tpu.memory_space<vmem>>, vector<1x128xf32>
      %26 = math.log %25 : vector<1x128xf32>
      %27 = arith.addf %24, %26 : vector<1x128xf32>
      %c0_16 = arith.constant 0 : index
      %c0_17 = arith.constant 0 : index
      %28 = vector.load %arg6[%c0_16, %c0_17] : memref<1x128xf32, #tpu.memory_space<vmem>>, vector<1x128xf32>
      %c0_18 = arith.constant 0 : index
      %c0_19 = arith.constant 0 : index
      %29 = vector.load %arg10[%c0_18, %c0_19] : memref<1x128xf32, #tpu.memory_space<vmem>>, vector<1x128xf32>
      %cst_20 = arith.constant 0.000000e+00 : f32
      %30 = vector.broadcast %cst_20 : f32 to vector<1x128xf32>
      %31 = arith.cmpf ogt, %28, %30 : vector<1x128xf32>
      %cst_21 = arith.constant 1.000000e+00 : f32
      %32 = vector.broadcast %cst_21 : f32 to vector<1x128xf32>
      %33 = arith.select %31, %28, %32 : vector<1x128xi1>, vector<1x128xf32>
      %34 = arith.divf %29, %33 : vector<1x128xf32>
      %cst_22 = arith.constant 0.000000e+00 : f32
      %35 = vector.broadcast %cst_22 : f32 to vector<1x128xf32>
      %36 = arith.cmpf ogt, %28, %35 : vector<1x128xf32>
      %37 = arith.subf %34, %27 : vector<1x128xf32>
      %cst_23 = arith.constant -1.000000e+00 : f32
      %38 = vector.broadcast %cst_23 : f32 to vector<1x128xf32>
      %39 = arith.mulf %38, %37 : vector<1x128xf32>
      %cst_24 = arith.constant 0.000000e+00 : f32
      %40 = vector.broadcast %cst_24 : f32 to vector<1x128xf32>
      %41 = arith.select %36, %39, %40 : vector<1x128xi1>, vector<1x128xf32>
      %c0_25 = arith.constant 0 : index
      %c0_26 = arith.constant 0 : index
      %42 = vector.load %arg7[%c0_25, %c0_26] : memref<1x128xf32, #tpu.memory_space<vmem>>, vector<1x128xf32>
      tpu.vector_store %arg7[%c0_25, %c0_26], %41 {strides = array<i32>} : memref<1x128xf32, #tpu.memory_space<vmem>>, vector<1x128xf32>,
    } else {
    }
    return
  }
  func.func @transform_0(%arg0: i32, %arg1: i32) -> (i32, i32) {
    %c0_i32 = arith.constant 0 : i32
    %c0_i32_0 = arith.constant 0 : i32
    return %c0_i32, %arg0 : i32, i32
  }
  func.func @transform_1(%arg0: i32, %arg1: i32) -> (i32, i32) {
    %c0_i32 = arith.constant 0 : i32
    %c0_i32_0 = arith.constant 0 : i32
    return %arg1, %c0_i32 : i32, i32
  }
  func.func @transform_2(%arg0: i32, %arg1: i32) -> (i32, i32) {
    %c0_i32 = arith.constant 0 : i32
    %c0_i32_0 = arith.constant 0 : i32
    return %c0_i32, %arg0 : i32, i32
  }
  func.func @transform_3(%arg0: i32, %arg1: i32) -> (i32, i32) {
    %c0_i32 = arith.constant 0 : i32
    %c0_i32_0 = arith.constant 0 : i32
    return %arg1, %c0_i32 : i32, i32
  }
  func.func @transform_4(%arg0: i32, %arg1: i32) -> (i32, i32) {
    %c0_i32 = arith.constant 0 : i32
    %c0_i32_0 = arith.constant 0 : i32
    return %c0_i32, %arg0 : i32, i32
  }
  func.func @transform_5(%arg0: i32, %arg1: i32) -> (i32, i32) {
    %c0_i32 = arith.constant 0 : i32
    %c0_i32_0 = arith.constant 0 : i32
    return %c0_i32, %arg0 : i32, i32
  }
}

</mosaic_0001>

<bundles_post_ra>
// kernel: tpu_custom_call.1
= control target key start
LH: loop header
LB: loop body
LE: loop exit
PB: predicated region body
PF: predicated region fallthrough
CT: control target
= control target key end

     0   :  { %10 = vsyncpa [#allocation6], 0  ;;  %s423_s0 = inlined_call_operand.hbm [shape: f32[32,128], index: 0, kind: input, shape index: {}]   ;;  %s424_s1 = inlined_call_operand.vmem [shape: f32[8,32], index: 1, kind: input, shape index: {}]   ;;  %s425_s2 = inlined_call_operand.vmem [shape: s32[1,128], index: 2, kind: input, shape index: {}]   ;;  %s426_s3 = inlined_call_operand.vmem [shape: s32[8,1], index: 3, kind: input, shape index: {}]   ;;  %s427_s4 = inlined_call_operand.vmem [shape: f32[1,128], index: 4, kind: input, shape index: {}]   ;;  %s428_s5 = inlined_call_operand.hbm [shape: f32[1,128], index: 5, kind: output, shape index: {}]  }
   0x1   :  { %11 = vsyncpa [#allocation7], 0  ;;  %s365_s18 = smov [#allocation5]  }
   0x2   :  { %s17_s19 = sshll.u32 %s365_s18, 4  ;;  %s18_s19 = int_to_ptr.vmem [resolvable:$true] %s17_s19 }
   0x3   :  { %s329_s20 = scalar_lea.vmem %s18_s19, 512  ;;  %p334_p1 = scmp.lt.s32.totalorder %s18_s19, %s18_s19 }
   0x4   :  { %p330_p0 = scmp.ne.s32.totalorder %s18_s19, %s329_s20  ;;  %p335_p2 = scmp.lt.s32.totalorder %s329_s20, %s329_s20 }
   0x6   :  { %p336_p3 = por %p335_p2, %p334_p1 }
   0x8   :  { %p337_p4 = pnand %p336_p3, %p330_p0 }
   0xa   :  { %340 = shalt.err (!%p337_p4)
}
   0xb   :  { %s366_s21 = smov 128   ;;  %s367_s22 = smov 8  }
   0xc   :  { %23 = dma.hbm_to_vmem [thread:$0]  %s423_s0, 512, %s18_s19, [#allocation6], %s366_s21, %s366_s21, %s367_s22  }
   0xd   :  { %361 = dma.done.wait [#allocation6], 512  }
   0xe   :  { %362 = vsyncadd [#allocation6], 4294966784  ;;  %v368_v0 = vmov 0.0   ;;  %vm369_vm0 = vmmov 0   ;;  %v370_v1 = vmov 0   ;;  %v46_v2 = vld [vmem:[#allocation5 + $0x18] sm:$0xff]  ;;  %v134_v9 = vlaneseq }
   0xf   :  { %40 = vst [vmem:[#allocation3] sm:$0x1] %v368_v0  ;;  %293 = vmatprep.subr.mxu0 %v368_v0  ;;  %41 = vst [vmem:[#allocation4] sm:$0x1] %v368_v0  ;;  %301 = vmatprep.mubr.msk.f32.mxu0 %vm369_vm0, %v368_v0  ;;  %v45_v3 = vld [vmem:[#allocation5 + $0x10] sm:$0xff]  ;;  %v147_v5 = vld [vmem:[%s426_s3] sm:$0xff] }
  0x10   :  { %312 = vset.pattern.permute.xlu0 %v370_v1  ;;  %v371_v4 = vmov -1e+30   ;;  %294 = vmatpush3.msra.mxu0 %v46_v2  ;;  %v44_v6 = vld [vmem:[#allocation5 + $0x8] sm:$0xff]  ;;  %v43_v7 = vld [vmem:[#allocation5] sm:$0xff]  ;;  %vm47_vm1 = vcmask 261120   ;;  %v135_v10 = vand.u32 127, %v134_v9 }
  0x11   :  { %39 = vst [vmem:[#allocation2] sm:$0x1] %v371_v4  ;;  %295 = vmatprep.subr.mxu0 %v368_v0  ;;  %153 = vperm.xlu0 %312, %v147_v5   ;;  %v42_v8 = vld [vmem:[%s424_s1] sm:$0xff]  ;;  %v139_v11 = vshrl.u32 %v134_v9, 7  ;;  %s372_s29 = smov [#allocation8]  }
  0x12   :  { %296 = vmatpush3.msra.mxu0 %v45_v3  ;;  %v286_v13 = vld [vmem:[%s425_s2] ss:$0 sm:$0xff]  ;;  %s276_s30 = sshll.u32 %s372_s29, 4  ;;  %s277_s30 = int_to_ptr.vmem [resolvable:$true] %s276_s30 }
  0x13   :  { %297 = vmatprep.subr.mxu0 %v368_v0  ;;  %vm142_vm2 = vcmp.ne.s32.totalorder %v135_v10, %v139_v11  ;;  %v183_v30 = vsub.s32 0, %v139_v11  ;;  %v260_v51 = vld [vmem:[%s427_s4] sm:$0x1]  ;;  %s341_s4 = scalar_lea.vmem %s277_s30, 16  ;;  %s345_s6 = scalar_lea.vmem %s277_s30, 32 }
  0x14   :  { %298 = vmatpush3.msra.mxu0 %v44_v6  ;;  %vm262_vm5 = vcmp.gt.f32.partialorder %v260_v51, 0.0  ;;  %p342_p5 = scmp.ne.s32.totalorder %s277_s30, %s341_s4  ;;  %p346_p6 = scmp.lt.s32.totalorder %s277_s30, %s277_s30 }
  0x15   :  { %299 = vmatprep.subr.mxu0 %v368_v0  ;;  %v263_v52 = vsel %vm262_vm5, %v260_v51, 1.0  ;;  %p347_p7 = scmp.lt.s32.totalorder %s345_s6, %s341_s4 }
  0x16   :  { %300 = vmatpush3.msra.mxu0 %v43_v7  ;;  %v158_v28 = vld [vmem:[#allocation4] sm:$0x1]  ;;  %v178_v46 = vld [vmem:[#allocation3] sm:$0x1] }
  0x17   :  { %302 = vmatmul.mubr.msk.f32.vlgmr.msra.gmra.mxu0 %vm47_vm1, %v42_v8  ;;  %p348_p8 = por %p347_p7, %p346_p6 }
  0x18   :  { %v173_v29 = vld [vmem:[#allocation2] sm:$0x1] }
  0x19   :  { %p349_p9 = pnand %p348_p8, %p342_p5 }
  0x8c   :  { %v154_v12 = vpop.permute.xlu0 %153 }
  0x8d   :  { %vm155_vm3 = vcmp.eq.s32.totalorder %v286_v13, %v154_v12 }
  0x8e   :  { %vm156_vm4 = vmand %vm155_vm3, %vm142_vm2 }
  0xd7   :  { %v117_v14 = vpop.f32.mrf.mxu0 }
  0xd8   :  { %v145_v15 = vsel %vm142_vm2, %v117_v14, -1e+30  ;;  %v157_v16 = vsel %vm156_vm4, %v117_v14, 0.0 }
  0xd9   :  { %v159_v17 = vrot.slane %v157_v16, 4  ;;  %v167_v18 = vrot.slane %v145_v15, 4  ;;  %v303_v19 = vpop.f32.mrf.mxu0 }
  0xdb   :  { %v160_v20 = vadd.f32 %v159_v17, %v157_v16  ;;  %v168_v21 = vmax.f32 %v145_v15, %v167_v18 }
  0xdd   :  { %v161_v22 = vrot.slane %v160_v20, 2  ;;  %v169_v23 = vrot.slane %v168_v21, 2 }
  0xdf   :  { %v162_v24 = vadd.f32 %v161_v22, %v160_v20  ;;  %v170_v25 = vmax.f32 %v168_v21, %v169_v23 }
  0xe1   :  { %v163_v26 = vrot.slane %v162_v24, 1  ;;  %v171_v27 = vrot.slane %v170_v25, 1 }
  0xe3   :  { %v164_v31 = vadd.f32 %v163_v26, %v162_v24  ;;  %v172_v32 = vmax.f32 %v170_v25, %v171_v27 }
  0xe5   :  { %v165_v33 = vadd.f32 %v164_v31, %v158_v28  ;;  %v174_v34 = vmax.f32 %v173_v29, %v172_v32 }
  0xe7   :  { %166 = vst [vmem:[#allocation4] sm:$0x1] %v165_v33  ;;  %v184_v35 = vrot.slane %v174_v34, %v183_v30  ;;  %197 = vst [vmem:[#allocation2] sm:$0x1] %v174_v34  ;;  %v175_v38 = vsub.f32 %v173_v29, %v174_v34 }
  0xe9   :  { %v186_v36 = vsub.f32 %v145_v15, %v184_v35  ;;  %v176_v39 = vmul.f32 1.442695, %v175_v38 }
  0xeb   :  { %v187_v37 = vmul.f32 1.442695, %v186_v36 }
  0xed   :  { %313 = vpow2.f32 %v187_v37 }
  0xee   :  { %315 = vpow2.f32 %v176_v39  ;;  %v261_v56 = vld [vmem:[#allocation4] sm:$0x1]  ;;  %v255_v58 = vld [vmem:[#allocation2] sm:$0x1] }
  0xef   :  { %317 = vrcp.f32 %v263_v52 }
  0xfa   :  { %v314_v40 = vpop.eup %313 }
  0xfb   :  { %v189_v41 = vrot.slane %v314_v40, 4  ;;  %v316_v45 = vpop.eup %315 }
  0xfc   :  { %v179_v48 = vmul.f32 %v316_v45, %v178_v46  ;;  %v318_v54 = vpop.eup %317 }
  0xfd   :  { %v190_v42 = vadd.f32 %v314_v40, %v189_v41  ;;  %v265_v60 = vmul.f32 %v318_v54, %v261_v56 }
  0xff   :  { %v191_v43 = vrot.slane %v190_v42, 2 }
 0x101   :  { %v192_v44 = vadd.f32 %v191_v43, %v190_v42 }
 0x103   :  { %v193_v47 = vrot.slane %v192_v44, 1 }
 0x105   :  { %v194_v49 = vadd.f32 %v193_v47, %v192_v44 }
 0x107   :  { %v195_v50 = vadd.f32 %v194_v49, %v179_v48 }
 0x109   :  { %196 = vst [vmem:[#allocation3] sm:$0x1] %v195_v50 }
 0x110   :  { %v256_v53 = vld [vmem:[#allocation3] sm:$0x1] }
 0x111   :  { %319 = vlog2.f32 %v256_v53 }
 0x11e   :  { %v320_v55 = vpop.eup %319 }
 0x11f   :  { %v258_v57 = vmul.f32 0.6931472, %v320_v55 }
 0x121   :  { %v259_v59 = vadd.f32 %v258_v57, %v255_v58 }
 0x123   :  { %v266_v61 = vsub.f32 %v265_v60, %v259_v59 }
 0x125   :  { %v267_v62 = vmul.f32 -1.0, %v266_v61 }
 0x127   :  { %v268_v63 = vsel %vm262_vm5, %v267_v62, 0.0 }
 0x128   :  { %269 = vst [vmem:[#allocation8] sm:$0x1] %v268_v63 }
 0x129   :  { %352 = shalt.err (!%p349_p9)
}
 0x12a   :  { %279 = dma.vmem_to_hbm [thread:$0]  %s277_s30, 16, %s428_s5, [#allocation7]  }
 0x12b   :  { %363 = dma.done.wait [#allocation7], 16  }
 0x12c   :  { %364 = vsyncadd [#allocation7], 4294967280 }
 0x12d   :  { %283 = vsyncpa [#allocation6], 1 }
 0x12e   :  { %284 = vsyncpa [#allocation7], 1 }

</bundles_post_ra>
